<compile_context>
chip_gen: v6e
topology: v6e:2x2x1
jax: 0.10.0
libtpu: 0.0.40
codegen_flags: <defaults>
</compile_context>

<pallas_src>
import functools

import jax
import jax.numpy as jnp
import numpy as np
from jax.experimental import pallas as pl
from jax.experimental.pallas import tpu as pltpu


# ----------------------------- Pallas kernel -------------------------------- #
def _rope_kernel(x_ref, c_ref, o_ref, *, shift, num_head, head_dim, roll_np):
    """RoPE on one lane-dense (seq_tile, num_head*head_dim) tile.

    x_ref: (TS, N*H)  input tile (f32 or bf16)
    c_ref: (TS, 3*H)  float32 packed per-position coefficients:
             [0 , H )  c0     -> multiplies x[k]
             [H , 2H)  c_fwd  -> multiplies partner x[k + shift]
             [2H, 3H)  c_bwd  -> multiplies partner x[k - shift]
    """
    x = x_ref[...].astype(jnp.float32)          # rotate in f32 (matches IPEX/torch)
    feat = x.shape[-1]
    c = c_ref[...]

    def widen(i):
        # Per-position coefficients are head_dim wide; repeat across heads so the
        # FMA stays lane-dense at width N*H (hidden under HBM on this mem-bound op).
        piece = c[:, i * head_dim:(i + 1) * head_dim]
        if num_head == 1:
            return piece
        return jnp.concatenate([piece] * num_head, axis=-1)

    c0, c_fwd, c_bwd = widen(0), widen(1), widen(2)

    # Partner elements via XLU rotations.  Coefficients are zero wherever the flat
    # roll would wrap across a head boundary, so the N*H-wide roll is safe.
    r_a = pltpu.roll(x, shift, axis=1)           # numpy convention: r_a[k] = x[k - shift]
    r_b = pltpu.roll(x, feat - shift, axis=1)    # numpy convention: r_b[k] = x[k + shift]
    if roll_np:
        out = x * c0 + r_b * c_fwd + r_a * c_bwd
    else:
        out = x * c0 + r_a * c_fwd + r_b * c_bwd
    o_ref[...] = out.astype(o_ref.dtype)


# --------------------------- tile-size heuristic ----------------------------- #
def _choose_seq_tile(B, S, feat, itemsize):
    # Sublane packing granularity: 8 rows (4-byte), 16 (2-byte), 32 (1-byte).
    align = 8 if itemsize >= 4 else (16 if itemsize == 2 else 32)
    if S <= align:
        return S
    # ~2 MiB x-tile: ~85%+ of HBM roofline per the measured tile sweep while
    # double-buffered in/out + coefficients + f32 temporaries stay inside the
    # 48 MiB scoped-VMEM limit on every generation (v7x physical = 64 MiB/TC).
    budget = 2 << 20
    rows = max(budget // max(feat * itemsize, 1), align)
    ts = min((rows // align) * align, S)
    # Keep >= ~8 total grid steps (v7x two-TensorCore split of the "parallel"
    # axes + warm double-buffering), but never shrink tiles below 128 rows.
    min_steps = 8
    min_rows = max(align, 128)
    while ts >= 2 * min_rows and B * ((S + ts - 1) // ts) < min_steps:
        ts = max(min_rows, ((ts // 2) // align) * align)
    return S if ts >= S else ts


# ------------------------------ pallas wrapper ------------------------------- #
def _rope_pallas(x, coef, *, shift, num_head, head_dim, roll_np, seq_tile=None):
    B, S, feat = x.shape
    Bc, _, CW = coef.shape                    # CW == 3 * head_dim, float32
    ts = seq_tile if seq_tile is not None else _choose_seq_tile(
        B, S, feat, x.dtype.itemsize)
    # Batch innermost: when coefficients are batch-shared (Bc == 1) their block
    # index is constant across consecutive steps and is not re-DMA'd.
    grid = (pl.cdiv(S, ts), B)

    if Bc == 1:
        coef_map = lambda s, b: (0, s, 0)
    else:
        coef_map = lambda s, b: (b, s, 0)

    kernel = functools.partial(_rope_kernel, shift=shift, num_head=num_head,
                               head_dim=head_dim, roll_np=roll_np)
    itemsize = x.dtype.itemsize
    cost = pl.CostEstimate(
        flops=int(5 * B * S * feat),
        transcendentals=0,
        bytes_accessed=int(2 * B * S * feat * itemsize + Bc * S * CW * 4),
    )

    return pl.pallas_call(
        kernel,
        out_shape=jax.ShapeDtypeStruct((B, S, feat), x.dtype),
        grid=grid,
        in_specs=[
            pl.BlockSpec((None, ts, feat), lambda s, b: (b, s, 0)),
            pl.BlockSpec((None, ts, CW), coef_map),
        ],
        out_specs=pl.BlockSpec((None, ts, feat), lambda s, b: (b, s, 0)),
        compiler_params=pltpu.CompilerParams(
            dimension_semantics=("parallel", "parallel"),
            vmem_limit_bytes=48 * 1024 * 1024,
        ),
        cost_estimate=cost,
    )(x, coef)


# ------------------- roll-direction probe (guarded, lazy) -------------------- #
@functools.lru_cache(maxsize=None)
def _roll_matches_numpy():
    """True iff pltpu.roll(x, s, axis)[i] == x[(i - s) % n] (jnp.roll convention)."""

    def _k(x_ref, o_ref):
        o_ref[...] = pltpu.roll(x_ref[...], 1, axis=1)

    try:
        x = jax.lax.broadcasted_iota(jnp.float32, (8, 128), 1)
        y = pl.pallas_call(_k, out_shape=jax.ShapeDtypeStruct((8, 128), jnp.float32))(x)
        return bool(np.asarray(jax.device_get(y))[0, 0] == 127.0)
    except Exception:
        return True  # assume documented jnp.roll convention if the probe can't run


# --------------------------- module-level wrapper ---------------------------- #
class IPEXRopePallas:
    """JAX/Pallas port of _IPEXRopeCPU (forward path, num_concats=None)."""

    def __init__(self, max_position_embeddings, pos_embd_dim, base=10000):
        # RotaryEmbedding.__init__: sin / cos tables, computed once on host.
        inv_freq = 1.0 / (
            base ** (np.arange(0, pos_embd_dim, 2, dtype=np.float64) / pos_embd_dim))
        t = np.arange(max_position_embeddings, dtype=np.float64)
        freqs = np.einsum("i,j->ij", t, inv_freq)              # [max_pos, dim/2]
        self._sin = jnp.asarray(np.sin(freqs), dtype=jnp.float32)
        self._cos = jnp.asarray(np.cos(freqs), dtype=jnp.float32)
        # Mirror of the torch module's sin_cos buffer (sin | cos), kept for reference.
        self.sin_cos = jnp.concatenate([self._sin, self._cos], axis=1)
        self._coef_cache = {}   # (head_dim, rotary_ndims, offset) -> [max_pos, 3*H]

    # -- packed coefficient table, built once per config and cached ------------ #
    def _coef_table(self, head_dim, rotary_ndims, offset):
        key = (head_dim, rotary_ndims, offset)
        tab = self._coef_cache.get(key)
        if tab is not None:
            return tab
        half = rotary_ndims // 2
        sin = self._sin[:, :half]                              # [max_pos, half]
        cos = self._cos[:, :half]
        P = sin.shape[0]
        tail = head_dim - rotary_ndims
        zeros_h = jnp.zeros((P, half), jnp.float32)
        tail_1 = jnp.ones((P, tail), jnp.float32)
        tail_0 = jnp.zeros((P, tail), jnp.float32)
        if offset == 1:    # GPT-J interleaved pairs (x[2j], x[2j+1]), shift = 1
            c0 = jnp.concatenate([jnp.repeat(cos, 2, axis=-1), tail_1], axis=-1)
            c_fwd = jnp.concatenate(
                [jnp.stack([-sin, zeros_h], axis=-1).reshape(P, rotary_ndims), tail_0],
                axis=-1)
            c_bwd = jnp.concatenate(
                [jnp.stack([zeros_h, sin], axis=-1).reshape(P, rotary_ndims), tail_0],
                axis=-1)
        else:              # NeoX / LLaMA rotate-half pairs (x[k], x[k+half])
            c0 = jnp.concatenate([cos, cos, tail_1], axis=-1)
            c_fwd = jnp.concatenate([-sin, zeros_h, tail_0], axis=-1)
            c_bwd = jnp.concatenate([zeros_h, sin, tail_0], axis=-1)
        tab = jnp.concatenate([c0, c_fwd, c_bwd], axis=-1)     # [max_pos, 3*H]
        self._coef_cache[key] = tab
        return tab

    # -- helper used only by the pure-JAX reference ---------------------------- #
    def _gather_sin_cos(self, position_ids, rotary_ndims):
        half = rotary_ndims // 2
        pos = jnp.asarray(position_ids)
        if pos.ndim == 1:
            pos = pos[None, :]
        sin = jnp.take(self._sin[:, :half], pos, axis=0)
        cos = jnp.take(self._cos[:, :half], pos, axis=0)
        return sin, cos

    def forward(self, x, position_ids, num_head, head_dim, offset, rotary_ndims,
                seq_len=None, num_concats=None, _seq_tile=None):
        # TODO(synk): num_concats (fused-QKV split -> (query, key, value)) path not
        # implemented; only the plain-x path of _IPEXRopeCPU.forward is covered.
        assert num_concats is None
        B, S, D = x.shape
        assert D == num_head * head_dim
        half = rotary_ndims // 2
        assert offset in (1, half), "offset must be 1 or rotary_ndims // 2"
        shift = 1 if offset == 1 else half

        tab = self._coef_table(head_dim, rotary_ndims, offset)   # [max_pos, 3*H] f32

        pos = jnp.asarray(position_ids)
        if pos.ndim == 1:
            pos = pos[None, :]
        shared = pos.shape[0] == 1
        if not shared:
            try:   # concrete (non-traced) position_ids: detect batch-identical rows
                pn = np.asarray(pos)
                shared = bool((pn == pn[:1]).all())
            except Exception:
                shared = False
        if shared:
            pos = pos[:1]
        coef = jnp.take(tab, pos, axis=0)        # [Bc, S, 3*H]: ONE gather per call

        out = _rope_pallas(x, coef, shift=shift, num_head=num_head,
                           head_dim=head_dim, roll_np=_roll_matches_numpy(),
                           seq_tile=_seq_tile)
        return out.reshape(B, S, num_head, head_dim)


# ------------------------------ pure-JAX reference --------------------------- #
def rope_reference(x, sin, cos, num_head, head_dim, offset, rotary_ndims):
    B, S, _ = x.shape
    half = rotary_ndims // 2
    sin4 = sin[:, :, None, :]
    cos4 = cos[:, :, None, :]
    x4 = x.reshape(B, S, num_head, head_dim).astype(jnp.float32)
    if offset == 1:  # interleaved (GPT-J)
        x1 = x4[..., 0:rotary_ndims:2]
        x2 = x4[..., 1:rotary_ndims:2]
        o1 = x1 * cos4 - x2 * sin4
        o2 = x2 * cos4 + x1 * sin4
        rotated = jnp.stack([o1, o2], axis=-1).reshape(B, S, num_head, rotary_ndims)
    else:            # rotate-half (NeoX / LLaMA)
        x1 = x4[..., :half]
        x2 = x4[..., half:rotary_ndims]
        o1 = x1 * cos4 - x2 * sin4
        o2 = x2 * cos4 + x1 * sin4
        rotated = jnp.concatenate([o1, o2], axis=-1)
    out = jnp.concatenate([rotated, x4[..., rotary_ndims:]], axis=-1)
    return out.astype(x.dtype)


# ------------------------------------ main ----------------------------------- #
if __name__ == "__main__":
    key = jax.random.PRNGKey(0)
    ok = True

    # (batch, seq, num_head, head_dim, rotary_ndims, offset, dtype, seq_tile, varying_pos)
    cases = [
        (2, 8,  4, 32, 32, 16, jnp.float32,  None, False),   # NeoX, full rotary
        (2, 8,  4, 32, 32, 1,  jnp.float32,  None, False),   # GPT-J interleaved
        (2, 8,  4, 32, 16, 8,  jnp.float32,  None, False),   # partial rotary, NeoX
        (2, 8,  4, 32, 16, 1,  jnp.float32,  None, False),   # partial rotary, GPT-J
        (1, 24, 4, 32, 32, 16, jnp.float32,  16,   False),   # partial final seq tile
        (2, 8,  4, 32, 32, 16, jnp.bfloat16, None, False),   # bf16 I/O, f32 rotate
        (2, 8,  4, 32, 32, 16, jnp.float32,  None, True),    # per-batch position_ids
    ]

    for (B, S, N, H, rot, off, dt, ts_override, varying) in cases:
        kx, key = jax.random.split(key)
        x = jax.random.normal(kx, (B, S, N * H), dtype=jnp.float32).astype(dt)
        if varying:
            base = jnp.arange(S, dtype=jnp.int32)
            position_ids = jnp.stack([base + 3 * b for b in range(B)], axis=0)
        else:
            position_ids = jnp.broadcast_to(
                jnp.arange(S, dtype=jnp.int32)[None, :], (B, S))

        rope = IPEXRopePallas(max_position_embeddings=64, pos_embd_dim=rot, base=10000)
        out = rope.forward(x, position_ids, N, H, offset=off, rotary_ndims=rot,
                           _seq_tile=ts_override)
        out = jax.block_until_ready(out)

        sin, cos = rope._gather_sin_cos(position_ids, rot)
        ref = rope_reference(x, sin, cos, N, H, off, rot)

        tol = 2e-2 if dt == jnp.bfloat16 else 1e-5
        good = np.allclose(np.asarray(out).astype(np.float32),
                           np.asarray(ref).astype(np.float32),
                           atol=tol, rtol=tol)
        ok = ok and good

    print("KERNEL_OK" if ok else "KERNEL_MISMATCH")
</pallas_src>

<mosaic_0001>
module attributes {stable_mosaic.version = 11 : i64} {
  func.func @_k(%arg0: memref<8x128xf32, #tpu.memory_space<vmem>>, %arg1: memref<8x128xf32, #tpu.memory_space<vmem>>) attributes {dimension_semantics = [], scalar_prefetch = 0 : i64, scratch_operands = 0 : i64, tpu.core_type = #tpu.core_type<tc>} {
    %c0 = arith.constant 0 : index
    %c0_0 = arith.constant 0 : index
    %0 = vector.load %arg0[%c0, %c0_0] : memref<8x128xf32, #tpu.memory_space<vmem>>, vector<8x128xf32>
    %c1_i32 = arith.constant 1 : i32
    %1 = tpu.dynamic_rotate %0 by %c1_i32 dim 1 : vector<8x128xf32>, i32 -> vector<8x128xf32>
    %c0_1 = arith.constant 0 : index
    %c0_2 = arith.constant 0 : index
    %2 = vector.load %arg1[%c0_1, %c0_2] : memref<8x128xf32, #tpu.memory_space<vmem>>, vector<8x128xf32>
    tpu.vector_store %arg1[%c0_1, %c0_2], %1 {strides = array<i32>} : memref<8x128xf32, #tpu.memory_space<vmem>>, vector<8x128xf32>,
    return
  }
}

module attributes {stable_mosaic.version = 11 : i64} {
  func.func @_rope_kernel(%arg0: i32, %arg1: i32, %arg2: memref<1x8x128xf32, #tpu.memory_space<vmem>>, %arg3: memref<1x8x96xf32, #tpu.memory_space<vmem>>, %arg4: memref<1x8x128xf32, #tpu.memory_space<vmem>>) attributes {dimension_semantics = [#tpu.dimension_semantics<parallel>, #tpu.dimension_semantics<parallel>], iteration_bounds = array<i64: 1, 2>, scalar_prefetch = 0 : i64, scratch_operands = 0 : i64, tpu.core_type = #tpu.core_type<tc>, window_params = [{transform_indices = @transform_0, window_bounds = array<i64: 1, 8, 128>}, {transform_indices = @transform_1, window_bounds = array<i64: 1, 8, 96>}, {transform_indices = @transform_2, window_bounds = array<i64: 1, 8, 128>}]} {
    %c0 = arith.constant 0 : index
    %c0_0 = arith.constant 0 : index
    %c0_1 = arith.constant 0 : index
    %0 = vector.load %arg2[%c0, %c0_0, %c0_1] : memref<1x8x128xf32, #tpu.memory_space<vmem>>, vector<1x8x128xf32>
    %1 = vector.shape_cast %0 : vector<1x8x128xf32> to vector<8x128xf32>
    %c0_2 = arith.constant 0 : index
    %c0_3 = arith.constant 0 : index
    %c0_4 = arith.constant 0 : index
    %2 = vector.load %arg3[%c0_2, %c0_3, %c0_4] : memref<1x8x96xf32, #tpu.memory_space<vmem>>, vector<1x8x96xf32>
    %3 = vector.shape_cast %2 : vector<1x8x96xf32> to vector<8x96xf32>
    %4 = vector.extract_strided_slice %3 {offsets = [0, 0], sizes = [8, 32], strides = [1, 1]} : vector<8x96xf32> to vector<8x32xf32>
    %5 = tpu.concatenate %4, %4, %4, %4 in 1 : vector<8x32xf32>, vector<8x32xf32>, vector<8x32xf32>, vector<8x32xf32> -> vector<8x128xf32>
    %6 = vector.extract_strided_slice %3 {offsets = [0, 32], sizes = [8, 32], strides = [1, 1]} : vector<8x96xf32> to vector<8x32xf32>
    %7 = tpu.concatenate %6, %6, %6, %6 in 1 : vector<8x32xf32>, vector<8x32xf32>, vector<8x32xf32>, vector<8x32xf32> -> vector<8x128xf32>
    %8 = vector.extract_strided_slice %3 {offsets = [0, 64], sizes = [8, 32], strides = [1, 1]} : vector<8x96xf32> to vector<8x32xf32>
    %9 = tpu.concatenate %8, %8, %8, %8 in 1 : vector<8x32xf32>, vector<8x32xf32>, vector<8x32xf32>, vector<8x32xf32> -> vector<8x128xf32>
    %c16_i32 = arith.constant 16 : i32
    %10 = tpu.dynamic_rotate %1 by %c16_i32 dim 1 : vector<8x128xf32>, i32 -> vector<8x128xf32>
    %c112_i32 = arith.constant 112 : i32
    %11 = tpu.dynamic_rotate %1 by %c112_i32 dim 1 : vector<8x128xf32>, i32 -> vector<8x128xf32>
    %12 = arith.mulf %1, %5 : vector<8x128xf32>
    %13 = arith.mulf %11, %7 : vector<8x128xf32>
    %14 = arith.addf %12, %13 : vector<8x128xf32>
    %15 = arith.mulf %10, %9 : vector<8x128xf32>
    %16 = arith.addf %14, %15 : vector<8x128xf32>
    %c0_5 = arith.constant 0 : index
    %c0_6 = arith.constant 0 : index
    %c0_7 = arith.constant 0 : index
    %17 = vector.load %arg4[%c0_5, %c0_6, %c0_7] : memref<1x8x128xf32, #tpu.memory_space<vmem>>, vector<1x8x128xf32>
    %18 = vector.shape_cast %17 : vector<1x8x128xf32> to vector<8x128xf32>
    %19 = vector.shape_cast %16 : vector<8x128xf32> to vector<1x8x128xf32>
    tpu.vector_store %arg4[%c0_5, %c0_6, %c0_7], %19 {strides = array<i32>} : memref<1x8x128xf32, #tpu.memory_space<vmem>>, vector<1x8x128xf32>,
    return
  }
  func.func @transform_0(%arg0: i32, %arg1: i32) -> (i32, i32, i32) {
    %c0_i32 = arith.constant 0 : i32
    %c0_i32_0 = arith.constant 0 : i32
    return %arg1, %arg0, %c0_i32 : i32, i32, i32
  }
  func.func @transform_1(%arg0: i32, %arg1: i32) -> (i32, i32, i32) {
    %c0_i32 = arith.constant 0 : i32
    %c0_i32_0 = arith.constant 0 : i32
    %c0_i32_1 = arith.constant 0 : i32
    return %c0_i32, %arg0, %c0_i32_0 : i32, i32, i32
  }
  func.func @transform_2(%arg0: i32, %arg1: i32) -> (i32, i32, i32) {
    %c0_i32 = arith.constant 0 : i32
    %c0_i32_0 = arith.constant 0 : i32
    return %arg1, %arg0, %c0_i32 : i32, i32, i32
  }
}

</mosaic_0001>

<bundles_post_ra>
// kernel: tpu_custom_call.1
= control target key start
LH: loop header
LB: loop body
LE: loop exit
PB: predicated region body
PF: predicated region fallthrough
CT: control target
= control target key end

     0   :  { %6 = vsyncpa [#allocation3], 0  ;;  %s106_s0 = inlined_call_operand.hbm [shape: f32[8,128], index: 0, kind: input, shape index: {}]   ;;  %s107_s1 = inlined_call_operand.hbm [shape: f32[8,128], index: 1, kind: output, shape index: {}]  }
   0x1   :  { %7 = vsyncpa [#allocation4], 0  ;;  %s87_s6 = smov [#allocation2]  }
   0x2   :  { %s14_s7 = sshll.u32 %s87_s6, 4  ;;  %s15_s7 = int_to_ptr.vmem [resolvable:$true] %s14_s7 }
   0x3   :  { %s51_s8 = scalar_lea.vmem %s15_s7, 128  ;;  %p56_p1 = scmp.lt.s32.totalorder %s15_s7, %s15_s7 }
   0x4   :  { %p52_p0 = scmp.ne.s32.totalorder %s15_s7, %s51_s8  ;;  %p57_p2 = scmp.lt.s32.totalorder %s51_s8, %s51_s8 }
   0x6   :  { %p58_p3 = por %p57_p2, %p56_p1 }
   0x8   :  { %p59_p4 = pnand %p58_p3, %p52_p0 }
   0xa   :  { %62 = shalt.err (!%p59_p4)
}
   0xb   :  { %17 = dma.hbm_to_vmem [thread:$0]  %s106_s0, 128, %s15_s7, [#allocation3]  }
   0xc   :  { %83 = dma.done.wait [#allocation3], 128  }
   0xd   :  { %84 = vsyncadd [#allocation3], 4294967168  ;;  %v21_v0 = vld [vmem:[#allocation2] sm:$0xff]  ;;  %s88_s11 = smov 1   ;;  %s89_s12 = smov [#allocation5]  }
   0xe   :  { %22 = vrot.lane.b32.xlu0 %v21_v0, %s88_s11  ;;  %s31_s13 = sshll.u32 %s89_s12, 4  ;;  %s32_s13 = int_to_ptr.vmem [resolvable:$true] %s31_s13 }
   0xf   :  { %s63_s14 = scalar_lea.vmem %s32_s13, 128  ;;  %p68_p6 = scmp.lt.s32.totalorder %s32_s13, %s32_s13 }
  0x10   :  { %p64_p5 = scmp.ne.s32.totalorder %s32_s13, %s63_s14  ;;  %p69_p7 = scmp.lt.s32.totalorder %s63_s14, %s63_s14 }
  0x12   :  { %p70_p8 = por %p69_p7, %p68_p6 }
  0x14   :  { %p71_p9 = pnand %p70_p8, %p64_p5 }
  0x80   :  { %v23_v1 = vpop.permute.xlu0 %22 }
  0x81   :  { %24 = vst [vmem:[#allocation5] sm:$0xff] %v23_v1 }
  0x82   :  { %74 = shalt.err (!%p71_p9)
}
  0x83   :  { %34 = dma.vmem_to_hbm [thread:$0]  %s32_s13, 128, %s107_s1, [#allocation4]  }
  0x84   :  { %85 = dma.done.wait [#allocation4], 128  }
  0x85   :  { %86 = vsyncadd [#allocation4], 4294967168 }
  0x86   :  { %38 = vsyncpa [#allocation3], 1 }
  0x87   :  { %39 = vsyncpa [#allocation4], 1 }

// kernel: tpu_custom_call.1
= control target key start
LH: loop header
LB: loop body
LE: loop exit
PB: predicated region body
PF: predicated region fallthrough
CT: control target
= control target key end

     0   :  { %7 = vsyncpa [#allocation3], 0  ;;  %s758_s0 = inlined_call_operand.hbm [shape: f32[2,8,128], index: 0, kind: input, shape index: {}]   ;;  %s759_s1 = inlined_call_operand.hbm [shape: f32[1,8,96], index: 1, kind: input, shape index: {}]   ;;  %s760_s2 = inlined_call_operand.hbm [shape: f32[2,8,128], index: 2, kind: output, shape index: {}]  }
   0x1   :  { %9 = vsyncpa [#allocation3 + $0x1], 0 }
   0x2   :  { %10 = vsyncpa [#allocation6], 0 }
   0x3   :  { %11 = vsyncpa [#allocation4], 0 }
   0x4   :  { %13 = vsyncpa [#allocation4 + $0x1], 0  ;;  %s593_s9 = smov 0   ;;  %s595_s10 = smov 0  }
   0x5   :  { %s597_s11 = smov 0   ;;  %s599_s12 = smov 0  }
   0x6   :  { %s601_s13 = smov 0   ;;  %s603_s14 = smov 0  }
   0x7 LB: > { %s337_s15 = sadd.s32 4294967295, %s568_s14   ;;  %s338_s16 = sadd.s32 4294967294, %s568_s14   ;;  %s568_s14 = sphi %s603_s14, %s19_s14   ;;  %s564_s13 = sphi %s601_s13, %s777_s13   ;;  %s560_s12 = sphi %s599_s12, %s776_s12   ;;  %s556_s11 = sphi %s597_s11, %s775_s11   ;;  %s552_s10 = sphi %s595_s10, %s774_s10   ;;  %s548_s9 = sphi %s593_s9, %s773_s9  }
   0x8   : > { %p53_p0 = scmp.ne.s32.totalorder %s552_s10, %s548_s9  ;;  %p627_p1 = scmp.eq.s32.totalorder %s337_s15, 0 }
   0x9   : > { %p631_p2 = scmp.eq.s32.totalorder %s337_s15, 1  ;;  %p111_p3 = scmp.eq.s32.totalorder %s338_s16, 1 }
   0xa   : > { %p637_p4 = por %p627_p1, %p53_p0  ;;  %p339_p5 = scmp.ge.s32.totalorder %s568_s14, 1 }
   0xb   : > { %p642_p6 = por %p111_p3, %p53_p0  ;;  %p118_p7 = scmp.lt.s32.totalorder %s568_s14, 3 }
   0xc   : > { %s764_s19 = scalar_select %p637_p4, 1, 0 }
   0xd   : > { %s765_s20 = scalar_select %p642_p6, 1, 0 }
   0xe   : > { %p647_p8 = pnand %p339_p5, %p118_p7  ;;  %s570_s22 = smov [#allocation5]  }
   0xf   : > { %s133_s23 = sshll.u32 %s570_s22, 4  ;;  %s28_s25 = sadd.s32 1, %s564_s13  ;;  %s134_s23 = int_to_ptr.vmem [resolvable:$true] %s133_s23 }
  0x10   : > { %p360_p10 = pneg %p647_p8  ;;  %s40_s26 = sadd.s32 1, %s556_s11 }
  0x11   : > { %p29_p12 = scmp.ge.s32.totalorder %s28_s25, 2  ;;  %s441_s27 = scalar_lea.vmem %s134_s23, 128 }
  0x12   : > { %p656_p11 = pnand %p360_p10, %p627_p1  ;;  %p442_p0 = scmp.ne.s32.totalorder %s134_s23, %s441_s27 }
  0x13   : > { %p449_p7 = scmp.lt.s32.totalorder %s134_s23, %s134_s23  ;;  %p450_p6 = scmp.lt.s32.totalorder %s441_s27, %s441_s27 }
  0x14   : > { %p432_p13 = pneg %p656_p11 }
  0x15   : > { %p451_p9 = por %p450_p6, %p449_p7 }
  0x16   : > { %p444_p3 = pnand %p442_p0, %p432_p13 }
  0x18   : > { %p445_p5 = pneg %p444_p3 }
  0x1a   : > { %p452_p4 = pnand %p451_p9, %p445_p5 }
  0x1c   : > { %455 = shalt.err (!%p452_p4)
}
  0x1d   : > { %363 = dma.hbm_to_vmem [thread:$0]  (!%p656_p11), %s759_s1, 128, %s134_s23, [#allocation6]  }
  0x1e   : > { %s779_s25 = smov (%p29_p12, %s28_s25), 0  ;;  %p47_p6 = scmp.ne.s32.totalorder %s556_s11, %s552_s10 }
  0x1f   : > { %p48_p4 = scmp.eq.s32.totalorder %s568_s14, 0  ;;  %s35_s30 = ssub.s32 %s564_s13, %s779_s25 }
  0x20   : > { %p373_p9 = scmp.lt.s32.totalorder %s568_s14, 2  ;;  %p38_p10 = scmp.eq.s32.totalorder %s35_s30, 0 }
  0x21   : > { %p49_p13 = por %p48_p4, %p47_p6  ;;  %p679_p0 = por %p631_p2, %p47_p6 }
  0x22   : > { %s144_s4 = sand.u32 1, %s556_s11   ;;  %s343_s7 = sshll.u32 %s564_s13, 7 }
  0x23   : > { %s685_s5 = scalar_select %p38_p10, %s556_s11, %s40_s26  }
  0x24   : > { %s342_s6 = sshll.u32 %s144_s4, 3  ;;  %s154_s16 = scalar_lea.hbm %s758_s0, %s343_s7 }
  0x25   : > { %s148_s22 = scalar_lea.vmem [#allocation2], %s342_s6  ;;  %p691_p11 = pnand %p373_p9, %p49_p13 }
  0x26   : > { %s156_s23 = sshll.u32 %s148_s22, 4  ;;  %s145_s18 = scalar_lea.sflag [#allocation3], %s144_s4  ;;  %s157_s23 = int_to_ptr.vmem [resolvable:$true] %s156_s23 }
  0x27   : > { %p458_p2 = pneg %p691_p11  ;;  %s469_s27 = scalar_lea.vmem %s157_s23, 128 }
  0x28   : > { %p470_p12 = scmp.ne.s32.totalorder %s157_s23, %s469_s27  ;;  %s571_s26 = smov [#allocation2]  }
  0x29   : > { %s474_s28 = sshll.u32 %s571_s26, 4  ;;  %s475_s28 = int_to_ptr.vmem [resolvable:$false] %s474_s28 }
  0x2a   : > { %p472_p3 = pnand %p470_p12, %p458_p2  ;;  %s476_s29 = scalar_lea.vmem %s475_s28, 256 }
  0x2b   : > { %p477_p7 = scmp.lt.s32.totalorder %s157_s23, %s475_s28  ;;  %p478_p6 = scmp.lt.s32.totalorder %s476_s29, %s469_s27 }
  0x2c   : > { %p473_p5 = pneg %p472_p3 }
  0x2d   : > { %p479_p4 = por %p478_p6, %p477_p7 }
  0x2f   : > { %p480_p10 = pnand %p479_p4, %p473_p5 }
  0x31   : > { %483 = shalt.err (!%p480_p10)
}
  0x32   : > { %367 = dma.hbm_to_vmem [thread:$0]  (!%p691_p11), %s154_s16, 128, %s157_s23, %s145_s18  }
  0x33   : > { %165 = sbr.rel (%p647_p8) target bundleno = 201 (0xc9), region = 28  ;;  %s702_s30 = sand.u32 (!%p647_p8), 1, %s552_s10  }
  0x34   : > { %s345_s4 = sshll.u32 (!%p647_p8), %s702_s30, 3  ;;  %s168_s6 = scalar_lea.sflag (!%p647_p8), [#allocation3], %s702_s30 }
  0x35   : > { %s171_s7 = scalar_lea.vmem (!%p647_p8), [#allocation2], %s345_s4  ;;  %p770_p9 = scmp.ne.s32.totalorder (!%p647_p8), %s764_s19, 0 }
  0x38   : > { %535 = dma.done.wait (%p770_p9), %s168_s6, 128  }
  0x39   : > { %537 = vsyncadd (%p770_p9), %s168_s6, 4294967168 }
  0x3a   : > { %539 = dma.done.wait (%p627_p1), [#allocation6], 128  }
  0x3b   : > { %541 = vsyncadd (%p627_p1), [#allocation6], 4294967168  ;;  %v197_v0 = vld [vmem:[#allocation5] sm:$0xff]  ;;  %s572_s21 = smov 32   ;;  %s573_s8 = smov 64   ;;  %v196_v1 = vld [vmem:[%s171_s7] sm:$0xff] }
  0x3c   : > { %199 = vrot.lane.b32.xlu0 %v197_v0, %s572_s21  ;;  %202 = vrot.lane.b32.xlu1 %v197_v0, %s573_s8  ;;  %s574_s15 = smov 96   ;;  %s575_s16 = smov 112   ;;  %vm208_vm0 = vcmask 261120   ;;  %vm210_vm1 = vcmask 523264   ;;  %vm212_vm2 = vcmask 785408  }
  0x3d   : > { %s576_s22 = smov 16   ;;  %s349_s17 = sshll.u32 %s560_s12, 7 }
  0x3e   : > { %s195_s19 = scalar_lea.vmem [#allocation7], %s345_s4  ;;  %s243_s27 = scalar_lea.hbm %s760_s2, %s349_s17 }
  0x3f   : > { %s245_s23 = sshll.u32 %s195_s19, 4  ;;  %s231_s26 = scalar_lea.sflag [#allocation4], %s702_s30  ;;  %s246_s23 = int_to_ptr.vmem [resolvable:$true] %s245_s23 }
  0x40   : > { %205 = vrot.lane.b32.xlu0 %v197_v0, %s574_s15  ;;  %222 = vrot.lane.b32.xlu1 %v196_v1, %s575_s16  ;;  %s484_s28 = scalar_lea.vmem %s246_s23, 128  ;;  %s577_s29 = smov [#allocation7]  }
  0x41   : > { %p485_p1 = scmp.ne.s32.totalorder %s246_s23, %s484_s28  ;;  %s488_s6 = sshll.u32 %s577_s29, 4  ;;  %s489_s6 = int_to_ptr.vmem [resolvable:$false] %s488_s6 }
  0x42   : > { %s490_s12 = scalar_lea.vmem %s489_s6, 256  ;;  %p491_p11 = scmp.lt.s32.totalorder %s246_s23, %s489_s6 }
  0x43   : > { %p486_p8 = pnand %p485_p1, %p679_p0  ;;  %p492_p2 = scmp.lt.s32.totalorder %s490_s12, %s484_s28 }
  0x44   : > { %220 = vrot.lane.b32.xlu0 %v196_v1, %s576_s22 }
  0x45   : > { %p487_p13 = pneg %p486_p8  ;;  %p493_p12 = por %p492_p2, %p491_p11 }
  0x47   : > { %p494_p3 = pnand %p493_p12, %p487_p13 }
  0xae   : > { %v200_v2 = vpop.permute.xlu0 %199  ;;  %v203_v4 = vpop.permute.xlu1 %202 }
  0xaf   : > { %v209_v3 = vsel %vm208_vm0, %v197_v0, %v200_v2 }
  0xb0   : > { %v211_v5 = vsel %vm210_vm1, %v209_v3, %v203_v4 }
  0xb2   : > { %v206_v6 = vpop.permute.xlu0 %205  ;;  %v223_v10 = vpop.permute.xlu1 %222 }
  0xb3   : > { %v213_v7 = vsel %vm212_vm2, %v211_v5, %v206_v6  ;;  %v214_v8 = vsel %vm208_vm0, %v206_v6, %v197_v0  ;;  %v217_v9 = vsel %vm208_vm0, %v203_v4, %v206_v6 }
  0xb4   : > { %v215_v11 = vsel %vm210_vm1, %v214_v8, %v200_v2  ;;  %v218_v12 = vsel %vm210_vm1, %v217_v9, %v197_v0  ;;  %v224_v15 = vmul.f32 %v213_v7, %v196_v1 }
  0xb5   : > { %v216_v13 = vsel %vm212_vm2, %v215_v11, %v203_v4  ;;  %v219_v14 = vsel %vm212_vm2, %v218_v12, %v200_v2 }
  0xb6   : > { %v225_v16 = vmul.f32 %v223_v10, %v216_v13  ;;  %v221_v17 = vpop.permute.xlu0 %220 }
  0xb7   : > { %v227_v18 = vmul.f32 %v221_v17, %v219_v14 }
  0xb8   : > { %v226_v19 = vadd.f32 %v225_v16, %v224_v15 }
  0xba   : > { %v228_v20 = vadd.f32 %v227_v18, %v226_v19 }
  0xbc   : > { %229 = vst [vmem:[%s195_s19] sm:$0xff] %v228_v20 }
  0xbd   : > { %497 = shalt.err (!%p494_p3)
}
  0xbe   : > { %s498_s4 = scalar_lea.hbm %s243_s27, 128  ;;  %s502_s21 = scalar_lea.hbm %s760_s2, 256 }
  0xbf   : > { %p499_p5 = scmp.ne.s32.totalorder %s243_s27, %s498_s4  ;;  %p503_p4 = scmp.lt.s32.totalorder %s243_s27, %s760_s2 }
  0xc0   : > { %p504_p10 = scmp.lt.s32.totalorder %s502_s21, %s498_s4 }
  0xc1   : > { %p500_p7 = pnand %p499_p5, %p679_p0 }
  0xc2   : > { %p505_p9 = por %p504_p10, %p503_p4 }
  0xc3   : > { %p501_p6 = pneg %p500_p7 }
  0xc5   : > { %p506_p1 = pnand %p505_p9, %p501_p6 }
  0xc7   : > { %509 = shalt.err (!%p506_p1)
}
  0xc8   : > { %358 = dma.vmem_to_hbm [thread:$0]  (%p679_p0), %s246_s23, 128, %s243_s27, %s231_s26  }
  0xc9 PF: > { %s257_s16 = sand.u32 1, %s548_s9   ;;  %p771_p8 = scmp.ne.s32.totalorder %s765_s20, 0 }
  0xca   : > { %p772_p13 = scmp.ge.s32.totalorder %s568_s14, 2  ;;  %s258_s22 = scalar_lea.sflag [#allocation4], %s257_s16 }
  0xcc   : > { %p369_p11 = pnand %p772_p13, %p771_p8 }
  0xce   : > { %p370_p2 = pneg %p369_p11 }
  0xd0   : > { %543 = dma.done.wait (%p370_p2), %s258_s22, 128  }
  0xd1   : > { %545 = vsyncadd (%p370_p2), %s258_s22, 4294967168  ;;  %s19_s14 = sadd.s32 1, %s568_s14   ;;  %s773_s9 = smov %s552_s10 }
  0xd2   : > { %p16_p12 = scmp.ge.s32.totalorder %s19_s14, 4   ;;  %s774_s10 = smov %s556_s11 }
  0xd3   : > { %s775_s11 = smov %s685_s5  ;;  %s776_s12 = smov %s564_s13 }
  0xd4   : > { %s777_s13 = smov %s779_s25  ;;  %18 = sbr.rel (!%p16_p12) target bundleno = 7 (0x7), region = 78 }
  0xd9   :  { %263 = vsyncpa [#allocation3], 1 }
  0xda   :  { %265 = vsyncpa [#allocation3 + $0x1], 1 }
  0xdb   :  { %266 = vsyncpa [#allocation6], 1 }
  0xdc   :  { %267 = vsyncpa [#allocation4], 1 }
  0xdd   :  { %269 = vsyncpa [#allocation4 + $0x1], 1 }

</bundles_post_ra>
